<compile_context>
chip_gen: v7x
topology: tpu7x:2x2x1
jax: 0.10.0
libtpu: 0.0.40
codegen_flags: <defaults>
</compile_context>

<pallas_src>
import jax
import jax.numpy as jnp
from jax.experimental import pallas as pl
from jax.experimental.pallas import tpu as pltpu


def _round_up(n, m):
    return ((n + m - 1) // m) * m


def _conv_toeplitz(w, l_in, l_out):
    """Dense block-Toeplitz matrix for a 'valid' 1D conv, channels-last flatten.

    w: (Cout, Cin, K).  Returns (l_in*Cin, l_out*Cout) f32 with
      M[l*Cin + ci, o*Cout + co] = w[co, ci, l - o]  if 0 <= l - o < K else 0
    so (x flattened as idx = pos*Cin + ch) @ M equals the valid conv output
    flattened as idx = pos*Cout + ch.
    """
    c_out, c_in, k = w.shape
    a = jnp.transpose(w, (2, 1, 0)).astype(jnp.float32)            # (K, Cin, Cout)
    t = jnp.arange(l_in)[:, None] - jnp.arange(l_out)[None, :]     # (l_in, l_out)
    valid = (t >= 0) & (t < k)
    blocks = a[jnp.clip(t, 0, k - 1)] * valid[:, :, None, None]    # (l_in,l_out,Cin,Cout)
    return jnp.transpose(blocks, (0, 2, 1, 3)).reshape(l_in * c_in, l_out * c_out)


def _stock_cnn_kernel(x_ref, w1_ref, b1_ref, w2_ref, b2_ref,
                      w3_ref, b3_ref, w4_ref, b4_ref, out_ref):
    x = x_ref[...]                                                  # (TB, W*F) bf16

    # ---- Conv1: one block-Toeplitz MXU matmul, lane-dense (L1*C1 lanes) ----
    y1 = jnp.dot(x, w1_ref[...], preferred_element_type=jnp.float32)
    y1 = jnp.maximum(y1 + b1_ref[...], 0.0).astype(jnp.bfloat16)    # (TB, L1*C1)

    # ---- Conv2: one block-Toeplitz MXU matmul (no in-kernel im2col/concat) ----
    y2 = jnp.dot(y1, w2_ref[...], preferred_element_type=jnp.float32)
    y2 = jnp.maximum(y2 + b2_ref[...], 0.0).astype(jnp.bfloat16)    # (TB, L2*C2)

    # ---- FC1: flatten already matches the kernel layout (w3 reordered in the
    #      wrapper); hidden dim zero-padded to a full 128-lane tile ----
    h = jnp.dot(y2, w3_ref[...], preferred_element_type=jnp.float32) + b3_ref[...]
    h = jnp.maximum(h, 0.0)                                         # (TB, 128) f32

    # ---- FC2 + Softmax(dim=1) fused into a 2-class logistic:
    #      d = logits[1]-logits[0], p1 = sigmoid(d), probs = [1-p1, p1] ----
    d = jnp.sum(h * w4_ref[...], axis=-1, keepdims=True) + b4_ref[...]   # (TB, 1)
    p1 = 1.0 / (1.0 + jnp.exp(-d))
    out_ref[...] = jnp.concatenate([1.0 - p1, p1], axis=-1).astype(out_ref.dtype)


def stock_cnn_forward(x, params, k1=3, k2=3, block_b=1024):
    """x: (B, window_size, n_features) float32. Returns (B, 2) probabilities."""
    w1, b1, w2, b2, w3, b3, w4, b4 = params
    B, W, F = x.shape
    L1 = W - k1 + 1
    L2 = L1 - k2 + 1
    C1, C2, H = w1.shape[0], w2.shape[0], w3.shape[0]
    HP = _round_up(H, 128)          # pad hidden dim to one full lane tile

    # ---------------- wrapper-side weight prep (tiny, pure XLA) ----------------
    w1t = _conv_toeplitz(w1, W, L1).astype(jnp.bfloat16)            # (W*F,   L1*C1)
    w2t = _conv_toeplitz(w2, L1, L2).astype(jnp.bfloat16)           # (L1*C1, L2*C2)
    b1r = jnp.tile(b1, L1).reshape(1, L1 * C1).astype(jnp.float32)  # bias per l*C1+c
    b2r = jnp.tile(b2, L2).reshape(1, L2 * C2).astype(jnp.float32)

    # FC1: reorder PyTorch channel-major flatten (c*L2 + l) into the kernel's
    # channels-last flatten (l*C2 + c); transpose; zero-pad hidden dim to HP.
    w3r = w3.reshape(H, C2, L2).transpose(0, 2, 1).reshape(H, L2 * C2)
    w3t = jnp.zeros((L2 * C2, HP), jnp.float32).at[:, :H].set(w3r.T).astype(jnp.bfloat16)
    b3r = jnp.zeros((1, HP), jnp.float32).at[0, :H].set(b3)

    # FC2 + softmax -> 2-class logistic (single f32 row padded to HP lanes).
    w4d = jnp.zeros((1, HP), jnp.float32).at[0, :H].set(w4[1] - w4[0])
    b4d = (b4[1] - b4[0]).reshape(1, 1).astype(jnp.float32)

    # ---------------- batch tiling ----------------
    x2 = x.reshape(B, W * F).astype(jnp.bfloat16)                   # raw input, no im2col
    TB = min(block_b, _round_up(B, 8))
    if B > 8:
        # Prefer >= 2 grid steps so v7x can shard the batch axis over both TCs.
        TB = min(TB, max(8, _round_up((B + 1) // 2, 8)))
    B_pad = _round_up(B, TB)
    if B_pad != B:
        x2 = jnp.pad(x2, ((0, B_pad - B), (0, 0)))
    n_blocks = B_pad // TB

    flops = 2 * B_pad * (W * F * L1 * C1 + L1 * C1 * L2 * C2 + L2 * C2 * HP + HP)
    bytes_accessed = (x2.size * 2
                      + (w1t.size + w2t.size + w3t.size) * 2
                      + (b1r.size + b2r.size + b3r.size + w4d.size + b4d.size) * 4
                      + B_pad * 2 * 4)

    out = pl.pallas_call(
        _stock_cnn_kernel,
        out_shape=jax.ShapeDtypeStruct((B_pad, 2), jnp.float32),
        grid=(n_blocks,),
        in_specs=[
            pl.BlockSpec((TB, W * F), lambda i: (i, 0)),            # x batch tile
            pl.BlockSpec((W * F, L1 * C1), lambda i: (0, 0)),       # conv1 Toeplitz
            pl.BlockSpec((1, L1 * C1), lambda i: (0, 0)),           # b1 (tiled)
            pl.BlockSpec((L1 * C1, L2 * C2), lambda i: (0, 0)),     # conv2 Toeplitz
            pl.BlockSpec((1, L2 * C2), lambda i: (0, 0)),           # b2 (tiled)
            pl.BlockSpec((L2 * C2, HP), lambda i: (0, 0)),          # fc1 (reordered+padded)
            pl.BlockSpec((1, HP), lambda i: (0, 0)),                # b3 (padded)
            pl.BlockSpec((1, HP), lambda i: (0, 0)),                # fc2 diff row
            pl.BlockSpec((1, 1), lambda i: (0, 0)),                 # fc2 diff bias
        ],
        out_specs=pl.BlockSpec((TB, 2), lambda i: (i, 0)),
        compiler_params=pltpu.CompilerParams(
            dimension_semantics=("parallel",),       # batch axis over TCs (v7x)
            vmem_limit_bytes=24 * 1024 * 1024),      # few-MiB working set; fits all gens
        cost_estimate=pl.CostEstimate(
            flops=int(flops),
            transcendentals=int(B_pad),
            bytes_accessed=int(bytes_accessed)),
    )(x2, w1t, b1r, w2t, b2r, w3t, b3r, w4d, b4d)

    return out[:B]


# ----------------------- pure-JAX f32 reference -----------------------
def _conv1d_ref(x_cf, w, b):
    """x_cf: (B, Cin, L), w: (Cout, Cin, K), b: (Cout,) — mirrors nn.Conv1d."""
    K = w.shape[2]
    L = x_cf.shape[2] - K + 1
    y = jnp.broadcast_to(b[None, :, None], (x_cf.shape[0], w.shape[0], L))
    for t in range(K):
        y = y + jnp.einsum('bcl,oc->bol', x_cf[:, :, t:t + L], w[:, :, t])
    return y


def stock_cnn_reference(x, params, k1, k2):
    w1, b1, w2, b2, w3, b3, w4, b4 = params
    x_cf = jnp.transpose(x, (0, 2, 1))
    y1 = jnp.maximum(_conv1d_ref(x_cf, w1, b1), 0.0)
    y2 = jnp.maximum(_conv1d_ref(y1, w2, b2), 0.0)
    flat = y2.reshape(y2.shape[0], -1)              # PyTorch channel-major Flatten
    h = jnp.maximum(flat @ w3.T + b3, 0.0)
    logits = h @ w4.T + b4
    return jax.nn.softmax(logits, axis=1)


def init_params(key, n_features, window_size, k1=3, k2=3):
    """Deterministic synthetic parameters with the module's shapes."""
    L2 = window_size - (k1 - 1) - (k2 - 1)
    ks = jax.random.split(key, 8)
    w1 = jax.random.normal(ks[0], (16, n_features, k1), jnp.float32) * 0.2
    b1 = jax.random.normal(ks[1], (16,), jnp.float32) * 0.05
    w2 = jax.random.normal(ks[2], (32, 16, k2), jnp.float32) * 0.1
    b2 = jax.random.normal(ks[3], (32,), jnp.float32) * 0.05
    w3 = jax.random.normal(ks[4], (64, 32 * L2), jnp.float32) * 0.05
    b3 = jax.random.normal(ks[5], (64,), jnp.float32) * 0.05
    w4 = jax.random.normal(ks[6], (2, 64), jnp.float32) * 0.1
    b4 = jax.random.normal(ks[7], (2,), jnp.float32) * 0.05
    return (w1, b1, w2, b2, w3, b3, w4, b4)


if __name__ == "__main__":
    n_features = 4
    window_size = 16
    batch = 2
    k1 = k2 = 3

    key = jax.random.PRNGKey(0)
    kx, kp = jax.random.split(key)
    x = jax.random.normal(kx, (batch, window_size, n_features), jnp.float32)
    params = init_params(kp, n_features, window_size, k1, k2)

    probs = stock_cnn_forward(x, params, k1, k2)
    probs = jax.block_until_ready(probs)

    assert probs.shape == (batch, 2)
    # Fused 2-class logistic: rows sum to 1 (up to f32 rounding).
    assert jnp.allclose(jnp.sum(probs, axis=1), 1.0, atol=1e-5)
    # Match the pure-f32 reference of the PyTorch module within bf16 tolerance.
    ref = stock_cnn_reference(x, params, k1, k2)
    assert jnp.allclose(probs, ref, atol=2e-2), (probs, ref)

    print("KERNEL_OK")
</pallas_src>

<mosaic_0001>
module attributes {stable_mosaic.version = 11 : i64} {
  func.func @_stock_cnn_kernel(%arg0: i32, %arg1: memref<8x64xbf16, #tpu.memory_space<vmem>>, %arg2: memref<64x224xbf16, #tpu.memory_space<vmem>>, %arg3: memref<1x224xf32, #tpu.memory_space<vmem>>, %arg4: memref<224x384xbf16, #tpu.memory_space<vmem>>, %arg5: memref<1x384xf32, #tpu.memory_space<vmem>>, %arg6: memref<384x128xbf16, #tpu.memory_space<vmem>>, %arg7: memref<1x128xf32, #tpu.memory_space<vmem>>, %arg8: memref<1x128xf32, #tpu.memory_space<vmem>>, %arg9: memref<1x1xf32, #tpu.memory_space<vmem>>, %arg10: memref<8x2xf32, #tpu.memory_space<vmem>>) attributes {dimension_semantics = [#tpu.dimension_semantics<parallel>], iteration_bounds = array<i64: 1>, scalar_prefetch = 0 : i64, scratch_operands = 0 : i64, tpu.core_type = #tpu.core_type<tc>, window_params = [{transform_indices = @transform_0, window_bounds = array<i64: 8, 64>}, {pipeline_mode = #tpu.pipeline_mode<synchronous>, transform_indices = @transform_1, window_bounds = array<i64: 64, 224>}, {pipeline_mode = #tpu.pipeline_mode<synchronous>, transform_indices = @transform_2, window_bounds = array<i64: 1, 224>}, {pipeline_mode = #tpu.pipeline_mode<synchronous>, transform_indices = @transform_3, window_bounds = array<i64: 224, 384>}, {pipeline_mode = #tpu.pipeline_mode<synchronous>, transform_indices = @transform_4, window_bounds = array<i64: 1, 384>}, {pipeline_mode = #tpu.pipeline_mode<synchronous>, transform_indices = @transform_5, window_bounds = array<i64: 384, 128>}, {pipeline_mode = #tpu.pipeline_mode<synchronous>, transform_indices = @transform_6, window_bounds = array<i64: 1, 128>}, {pipeline_mode = #tpu.pipeline_mode<synchronous>, transform_indices = @transform_7, window_bounds = array<i64: 1, 128>}, {pipeline_mode = #tpu.pipeline_mode<synchronous>, transform_indices = @transform_8, window_bounds = array<i64: 1, 1>}, {transform_indices = @transform_9, window_bounds = array<i64: 8, 2>}]} {
    %c0 = arith.constant 0 : index
    %c0_0 = arith.constant 0 : index
    %0 = vector.load %arg1[%c0, %c0_0] : memref<8x64xbf16, #tpu.memory_space<vmem>>, vector<8x64xbf16>
    %c0_1 = arith.constant 0 : index
    %c0_2 = arith.constant 0 : index
    %1 = vector.load %arg2[%c0_1, %c0_2] : memref<64x224xbf16, #tpu.memory_space<vmem>>, vector<64x224xbf16>
    %cst = arith.constant dense<0.000000e+00> : vector<8x224xf32>
    %2 = tpu.matmul %0, %1, %cst {dimension_numbers = #tpu.dot_dimension_numbers<[1], [0], [0], [1], [0, 0, 1, 1], [], []>} : vector<8x64xbf16>, vector<64x224xbf16>, vector<8x224xf32> -> vector<8x224xf32>
    %c0_3 = arith.constant 0 : index
    %c0_4 = arith.constant 0 : index
    %3 = vector.load %arg3[%c0_3, %c0_4] : memref<1x224xf32, #tpu.memory_space<vmem>>, vector<1x224xf32>
    %4 = vector.broadcast %3 : vector<1x224xf32> to vector<8x224xf32>
    %5 = arith.addf %2, %4 : vector<8x224xf32>
    %cst_5 = arith.constant 0.000000e+00 : f32
    %6 = vector.broadcast %cst_5 : f32 to vector<8x224xf32>
    %7 = arith.maximumf %5, %6 : vector<8x224xf32>
    %8 = arith.truncf %7 : vector<8x224xf32> to vector<8x224xbf16>
    %c0_6 = arith.constant 0 : index
    %c0_7 = arith.constant 0 : index
    %9 = vector.load %arg4[%c0_6, %c0_7] : memref<224x384xbf16, #tpu.memory_space<vmem>>, vector<224x384xbf16>
    %cst_8 = arith.constant dense<0.000000e+00> : vector<8x384xf32>
    %10 = tpu.matmul %8, %9, %cst_8 {dimension_numbers = #tpu.dot_dimension_numbers<[1], [0], [0], [1], [0, 0, 1, 1], [], []>} : vector<8x224xbf16>, vector<224x384xbf16>, vector<8x384xf32> -> vector<8x384xf32>
    %c0_9 = arith.constant 0 : index
    %c0_10 = arith.constant 0 : index
    %11 = vector.load %arg5[%c0_9, %c0_10] : memref<1x384xf32, #tpu.memory_space<vmem>>, vector<1x384xf32>
    %12 = vector.broadcast %11 : vector<1x384xf32> to vector<8x384xf32>
    %13 = arith.addf %10, %12 : vector<8x384xf32>
    %cst_11 = arith.constant 0.000000e+00 : f32
    %14 = vector.broadcast %cst_11 : f32 to vector<8x384xf32>
    %15 = arith.maximumf %13, %14 : vector<8x384xf32>
    %16 = arith.truncf %15 : vector<8x384xf32> to vector<8x384xbf16>
    %c0_12 = arith.constant 0 : index
    %c0_13 = arith.constant 0 : index
    %17 = vector.load %arg6[%c0_12, %c0_13] : memref<384x128xbf16, #tpu.memory_space<vmem>>, vector<384x128xbf16>
    %cst_14 = arith.constant dense<0.000000e+00> : vector<8x128xf32>
    %18 = tpu.matmul %16, %17, %cst_14 {dimension_numbers = #tpu.dot_dimension_numbers<[1], [0], [0], [1], [0, 0, 1, 1], [], []>} : vector<8x384xbf16>, vector<384x128xbf16>, vector<8x128xf32> -> vector<8x128xf32>
    %c0_15 = arith.constant 0 : index
    %c0_16 = arith.constant 0 : index
    %19 = vector.load %arg7[%c0_15, %c0_16] : memref<1x128xf32, #tpu.memory_space<vmem>>, vector<1x128xf32>
    %20 = vector.broadcast %19 : vector<1x128xf32> to vector<8x128xf32>
    %21 = arith.addf %18, %20 : vector<8x128xf32>
    %cst_17 = arith.constant 0.000000e+00 : f32
    %22 = vector.broadcast %cst_17 : f32 to vector<8x128xf32>
    %23 = arith.maximumf %21, %22 : vector<8x128xf32>
    %c0_18 = arith.constant 0 : index
    %c0_19 = arith.constant 0 : index
    %24 = vector.load %arg8[%c0_18, %c0_19] : memref<1x128xf32, #tpu.memory_space<vmem>>, vector<1x128xf32>
    %25 = vector.broadcast %24 : vector<1x128xf32> to vector<8x128xf32>
    %26 = arith.mulf %23, %25 : vector<8x128xf32>
    %cst_20 = arith.constant dense<0.000000e+00> : vector<8xf32>
    %27 = vector.multi_reduction <add>, %26, %cst_20 [1] : vector<8x128xf32> to vector<8xf32>
    %28 = vector.shape_cast %27 : vector<8xf32> to vector<8x1xf32>
    %c0_21 = arith.constant 0 : index
    %c0_22 = arith.constant 0 : index
    %29 = vector.load %arg9[%c0_21, %c0_22] : memref<1x1xf32, #tpu.memory_space<vmem>>, vector<1x1xf32>
    %30 = vector.broadcast %29 : vector<1x1xf32> to vector<8x1xf32>
    %31 = arith.addf %28, %30 : vector<8x1xf32>
    %cst_23 = arith.constant 0.000000e+00 : f32
    %32 = vector.broadcast %cst_23 : f32 to vector<8x1xf32>
    %33 = arith.subf %32, %31 : vector<8x1xf32>
    %34 = math.exp %33 : vector<8x1xf32>
    %cst_24 = arith.constant 1.000000e+00 : f32
    %35 = vector.broadcast %cst_24 : f32 to vector<8x1xf32>
    %36 = arith.addf %35, %34 : vector<8x1xf32>
    %cst_25 = arith.constant 1.000000e+00 : f32
    %37 = vector.broadcast %cst_25 : f32 to vector<8x1xf32>
    %38 = arith.divf %37, %36 : vector<8x1xf32>
    %cst_26 = arith.constant 1.000000e+00 : f32
    %39 = vector.broadcast %cst_26 : f32 to vector<8x1xf32>
    %40 = arith.subf %39, %38 : vector<8x1xf32>
    %41 = tpu.concatenate %40, %38 in 1 : vector<8x1xf32>, vector<8x1xf32> -> vector<8x2xf32>
    %c0_27 = arith.constant 0 : index
    %c0_28 = arith.constant 0 : index
    %42 = vector.load %arg10[%c0_27, %c0_28] : memref<8x2xf32, #tpu.memory_space<vmem>>, vector<8x2xf32>
    tpu.vector_store %arg10[%c0_27, %c0_28], %41 {strides = array<i32>} : memref<8x2xf32, #tpu.memory_space<vmem>>, vector<8x2xf32>,
    return
  }
  func.func @transform_0(%arg0: i32) -> (i32, i32) {
    %c0_i32 = arith.constant 0 : i32
    %c0_i32_0 = arith.constant 0 : i32
    return %arg0, %c0_i32 : i32, i32
  }
  func.func @transform_1(%arg0: i32) -> (i32, i32) {
    %c0_i32 = arith.constant 0 : i32
    %c0_i32_0 = arith.constant 0 : i32
    %c0_i32_1 = arith.constant 0 : i32
    return %c0_i32, %c0_i32_0 : i32, i32
  }
  func.func @transform_2(%arg0: i32) -> (i32, i32) {
    %c0_i32 = arith.constant 0 : i32
    %c0_i32_0 = arith.constant 0 : i32
    %c0_i32_1 = arith.constant 0 : i32
    return %c0_i32, %c0_i32_0 : i32, i32
  }
  func.func @transform_3(%arg0: i32) -> (i32, i32) {
    %c0_i32 = arith.constant 0 : i32
    %c0_i32_0 = arith.constant 0 : i32
    %c0_i32_1 = arith.constant 0 : i32
    return %c0_i32, %c0_i32_0 : i32, i32
  }
  func.func @transform_4(%arg0: i32) -> (i32, i32) {
    %c0_i32 = arith.constant 0 : i32
    %c0_i32_0 = arith.constant 0 : i32
    %c0_i32_1 = arith.constant 0 : i32
    return %c0_i32, %c0_i32_0 : i32, i32
  }
  func.func @transform_5(%arg0: i32) -> (i32, i32) {
    %c0_i32 = arith.constant 0 : i32
    %c0_i32_0 = arith.constant 0 : i32
    %c0_i32_1 = arith.constant 0 : i32
    return %c0_i32, %c0_i32_0 : i32, i32
  }
  func.func @transform_6(%arg0: i32) -> (i32, i32) {
    %c0_i32 = arith.constant 0 : i32
    %c0_i32_0 = arith.constant 0 : i32
    %c0_i32_1 = arith.constant 0 : i32
    return %c0_i32, %c0_i32_0 : i32, i32
  }
  func.func @transform_7(%arg0: i32) -> (i32, i32) {
    %c0_i32 = arith.constant 0 : i32
    %c0_i32_0 = arith.constant 0 : i32
    %c0_i32_1 = arith.constant 0 : i32
    return %c0_i32, %c0_i32_0 : i32, i32
  }
  func.func @transform_8(%arg0: i32) -> (i32, i32) {
    %c0_i32 = arith.constant 0 : i32
    %c0_i32_0 = arith.constant 0 : i32
    %c0_i32_1 = arith.constant 0 : i32
    return %c0_i32, %c0_i32_0 : i32, i32
  }
  func.func @transform_9(%arg0: i32) -> (i32, i32) {
    %c0_i32 = arith.constant 0 : i32
    %c0_i32_0 = arith.constant 0 : i32
    return %arg0, %c0_i32 : i32, i32
  }
}

</mosaic_0001>

<bundles_post_ra>
// kernel: tpu_custom_call.1
= control target key start
LH: loop header
LB: loop body
LE: loop exit
PB: predicated region body
PF: predicated region fallthrough
CT: control target
= control target key end

     0   :  { %s1408_s0 = inlined_call_operand.hbm [shape: bf16[8,64], index: 0, kind: input, shape index: {}]   ;;  %s1409_s1 = inlined_call_operand.hbm [shape: bf16[64,224], index: 1, kind: input, shape index: {}]   ;;  %s1410_s2 = inlined_call_operand.vmem [shape: f32[1,224], index: 2, kind: input, shape index: {}]   ;;  %s1411_s3 = inlined_call_operand.hbm [shape: bf16[224,384], index: 3, kind: input, shape index: {}]   ;;  %s1412_s4 = inlined_call_operand.vmem [shape: f32[1,384], index: 4, kind: input, shape index: {}]   ;;  %s1413_s5 = inlined_call_operand.hbm [shape: bf16[384,128], index: 5, kind: input, shape index: {}]   ;;  %s1414_s6 = inlined_call_operand.vmem [shape: f32[1,128], index: 6, kind: input, shape index: {}]   ;;  %s1415_s7 = inlined_call_operand.vmem [shape: f32[1,128], index: 7, kind: input, shape index: {}]   ;;  %s1416_s8 = inlined_call_operand.<no memory space> [shape: f32[1,1], index: 8, kind: input, shape index: {}]   ;;  %s1417_s9 = inlined_call_operand.vmem [shape: f32[8,2], index: 9, kind: output, shape index: {}]  }
   0x1   :  { %v14_v0 = vstv %s1416_s8 }
   0x2   :  { %15 = vst [vmem:[#allocation2] sm:$0x1] %v14_v0 }
   0x3   :  { %16 = vsyncpa [#allocation4], 0 }
   0x4   :  { %17 = vsyncpa [#allocation6], 0 }
   0x5   :  { %18 = vsyncpa [#allocation9], 0  ;;  %s1241_s11 = smov [#allocation5]   ;;  %s1147_s15 = scalar_lea.hbm %s1409_s1, 1024 }
   0x6   :  { %s34_s12 = sshll.u32 %s1241_s11, 4  ;;  %p1148_p0 = scmp.ne.s32.totalorder %s1409_s1, %s1147_s15  ;;  %s35_s12 = int_to_ptr.vmem [resolvable:$true] %s34_s12 }
   0x7   :  { %p1151_p1 = scmp.lt.u32.totalorder %s1147_s15, %s1409_s1 }
   0x9   :  { %p1153_p2 = pnand %p1151_p1, %p1148_p0 }
   0xb   :  { %1156 = shalt.err (!%p1153_p2)
}
   0xc   :  { %s1157_s8 = scalar_lea.vmem %s35_s12, 1024  ;;  %p1162_p4 = scmp.lt.s32.totalorder %s35_s12, %s35_s12 }
   0xd   :  { %p1158_p3 = scmp.ne.s32.totalorder %s35_s12, %s1157_s8  ;;  %p1163_p5 = scmp.lt.s32.totalorder %s1157_s8, %s1157_s8 }
   0xf   :  { %p1164_p6 = por %p1163_p5, %p1162_p4 }
  0x11   :  { %p1165_p7 = pnand %p1164_p6, %p1158_p3 }
  0x13   :  { %1168 = shalt.err (!%p1165_p7)
}
  0x14   :  { %s1242_s20 = smov 128   ;;  %s1243_s21 = smov 8  }
  0x15   :  { %40 = dma.hbm_to_vmem [thread:$0]  %s1409_s1, 1024, %s35_s12, [#allocation6], %s1242_s20, %s1242_s20, %s1243_s21  }
  0x16   :  { %s1244_s24 = smov [#allocation3]   ;;  %s1245_s26 = smov [#allocation7]  }
  0x17   :  { %s25_s25 = sshll.u32 %s1244_s24, 4  ;;  %s48_s27 = sshll.u32 %s1245_s26, 4  ;;  %s26_s25 = int_to_ptr.vmem [resolvable:$true] %s25_s25  ;;  %s49_s27 = int_to_ptr.vmem [resolvable:$true] %s48_s27 }
  0x18   :  { %s1169_s30 = scalar_lea.hbm %s1408_s0, 64 }
  0x19   :  { %p1170_p8 = scmp.ne.s32.totalorder %s1408_s0, %s1169_s30  ;;  %p1173_p9 = scmp.lt.u32.totalorder %s1169_s30, %s1408_s0 }
  0x1b   :  { %p1175_p10 = pnand %p1173_p9, %p1170_p8 }
  0x1d   :  { %1178 = shalt.err (!%p1175_p10)
}
  0x1e   :  { %s1179_s1 = scalar_lea.vmem %s26_s25, 64  ;;  %p1184_p12 = scmp.lt.s32.totalorder %s26_s25, %s26_s25 }
  0x1f   :  { %p1180_p11 = scmp.ne.s32.totalorder %s26_s25, %s1179_s1  ;;  %p1185_p13 = scmp.lt.s32.totalorder %s1179_s1, %s1179_s1 }
  0x21   :  { %p1186_p0 = por %p1185_p13, %p1184_p12 }
  0x23   :  { %p1187_p1 = pnand %p1186_p0, %p1180_p11 }
  0x25   :  { %1190 = shalt.err (!%p1187_p1)
}
  0x26   :  { %28 = dma.hbm_to_vmem [thread:$0]  %s1408_s0, 64, %s26_s25, [#allocation4]  }
  0x27   :  { %s1191_s18 = scalar_lea.hbm %s1411_s3, 5376 }
  0x28   :  { %p1192_p2 = scmp.ne.s32.totalorder %s1411_s3, %s1191_s18  ;;  %p1195_p3 = scmp.lt.u32.totalorder %s1191_s18, %s1411_s3 }
  0x2a   :  { %p1197_p4 = pnand %p1195_p3, %p1192_p2 }
  0x2c   :  { %1200 = shalt.err (!%p1197_p4)
}
  0x2d   :  { %s1201_s22 = scalar_lea.vmem %s49_s27, 5376  ;;  %p1206_p6 = scmp.lt.s32.totalorder %s49_s27, %s49_s27 }
  0x2e   :  { %p1202_p5 = scmp.ne.s32.totalorder %s49_s27, %s1201_s22  ;;  %p1207_p7 = scmp.lt.s32.totalorder %s1201_s22, %s1201_s22 }
  0x30   :  { %p1208_p8 = por %p1207_p7, %p1206_p6 }
  0x32   :  { %p1209_p9 = pnand %p1208_p8, %p1202_p5 }
  0x34   :  { %1212 = shalt.err (!%p1209_p9)
}
  0x35   :  { %s1246_s0 = smov 192   ;;  %s1247_s23 = smov 12  }
  0x36   :  { %54 = dma.hbm_to_vmem [thread:$0]  %s1411_s3, 5376, %s49_s27, [#allocation6], %s1246_s0, %s1246_s0, %s1247_s23  }
  0x37   :  { %s1248_s26 = smov [#allocation8]   ;;  %s1213_s10 = scalar_lea.hbm %s1413_s5, 3072 }
  0x38   :  { %s62_s28 = sshll.u32 %s1248_s26, 4  ;;  %p1214_p10 = scmp.ne.s32.totalorder %s1413_s5, %s1213_s10  ;;  %s63_s28 = int_to_ptr.vmem [resolvable:$true] %s62_s28 }
  0x39   :  { %p1217_p11 = scmp.lt.u32.totalorder %s1213_s10, %s1413_s5 }
  0x3b   :  { %p1219_p12 = pnand %p1217_p11, %p1214_p10 }
  0x3d   :  { %1222 = shalt.err (!%p1219_p12)
}
  0x3e   :  { %s1223_s12 = scalar_lea.vmem %s63_s28, 3072  ;;  %p1228_p0 = scmp.lt.s32.totalorder %s63_s28, %s63_s28 }
  0x3f   :  { %p1224_p13 = scmp.ne.s32.totalorder %s63_s28, %s1223_s12  ;;  %p1229_p1 = scmp.lt.s32.totalorder %s1223_s12, %s1223_s12 }
  0x41   :  { %p1230_p2 = por %p1229_p1, %p1228_p0 }
  0x43   :  { %p1231_p3 = pnand %p1230_p2, %p1224_p13 }
  0x45   :  { %1234 = shalt.err (!%p1231_p3)
}
  0x46   :  { %s1249_s3 = smov 64   ;;  %s1250_s27 = smov 4  }
  0x47   :  { %68 = dma.hbm_to_vmem [thread:$0]  %s1413_s5, 3072, %s63_s28, [#allocation9], %s1249_s3, %s1249_s3, %s1250_s27  }
  0x48   :  { %1235 = dma.done.wait [#allocation4], 64  }
  0x49   :  { %1236 = vsyncadd [#allocation4], 4294967232 }
  0x4a   :  { %1237 = dma.done.wait [#allocation6], 6400  }
  0x4b   :  { %1238 = vsyncadd [#allocation6], 4294960896 }
  0x4c   :  { %1239 = dma.done.wait [#allocation9], 3072  }
  0x4d   :  { %1240 = vsyncadd [#allocation9], 4294964224  ;;  %v1251_v1 = vmov 0   ;;  %v1051_v2 = vld [vmem:[#allocation5 + $0x4] ss:$8 sps:$4 sm:$0xff]   ;;  %vm149_vm0 = vcmask 523264   ;;  %v99_v55 = vlaneseq }
  0x4e   :  { %185 = vmatprep.mubr.bf16.mxu0 %v1251_v1  ;;  %v1053_v3 = vld [vmem:[#allocation5] ss:$8 sps:$4 sm:$0xff]   ;;  %153 = vmatprep.subr.bf16.mxu0 %v1051_v2  ;;  %v1054_v4 = vld [vmem:[#allocation5 + $0x14] ss:$8 sps:$4 sm:$0xff]   ;;  %v1056_v5 = vld [vmem:[#allocation5 + $0x10] ss:$8 sps:$4 sm:$0xff]  }
  0x4f   :  { %154 = vmatpush1.bf16.msra.mxu0 %v1053_v3  ;;  %v1057_v6 = vld [vmem:[#allocation5 + $0x24] ss:$8 sps:$4 sm:$0xff]   ;;  %v1059_v7 = vld [vmem:[#allocation5 + $0x20] ss:$8 sps:$4 sm:$0xff]   ;;  %v1060_v10 = vld [vmem:[#allocation5 + $0x34] ss:$8 sps:$4 sm:$0xff]  }
  0x50   :  { %155 = vmatprep.subr.bf16.mxu0 %v1054_v4  ;;  %v1063_v8 = vld [vmem:[#allocation7 + $0x4] ss:$12 sps:$4 sm:$0xff]   ;;  %v1065_v9 = vld [vmem:[#allocation7] ss:$12 sps:$4 sm:$0xff]   ;;  %v1067_v11 = vld [vmem:[#allocation7 + $0x1c] ss:$12 sps:$4 sm:$0xff]  }
  0x51   :  { %499 = vmatprep.subr.bf16.mxu1 %v1063_v8  ;;  %v1069_v12 = vld [vmem:[#allocation7 + $0x18] ss:$12 sps:$4 sm:$0xff]   ;;  %v1071_v14 = vld [vmem:[#allocation7 + $0x34] ss:$12 sps:$4 sm:$0xff]   ;;  %v88_v15 = vld [vmem:[#allocation3] sm:$0xf] }
  0x52   :  { %500 = vmatpush1.bf16.msra.mxu1 %v1065_v9  ;;  %v1062_v13 = vld [vmem:[#allocation5 + $0x30] ss:$8 sps:$4 sm:$0xff]   ;;  %v1066_v18 = vld [vmem:[#allocation7 + $0x8] ss:$12 sps:$4 sm:$0xff]   ;;  %v1070_v21 = vld [vmem:[#allocation7 + $0x20] ss:$12 sps:$4 sm:$0xff]  }
  0x53   :  { %156 = vmatpush1.bf16.msra.mxu0 %v1056_v5  ;;  %501 = vmatprep.subr.bf16.mxu1 %v1067_v11  ;;  %v1073_v16 = vld [vmem:[#allocation7 + $0x30] ss:$12 sps:$4 sm:$0xff]   ;;  %v1075_v17 = vld [vmem:[#allocation7 + $0x4c] ss:$12 sps:$4 sm:$0xff]   ;;  %v1077_v19 = vld [vmem:[#allocation7 + $0x48] ss:$12 sps:$4 sm:$0xff]  }
  0x54   :  { %157 = vmatprep.subr.bf16.mxu0 %v1057_v6  ;;  %v1079_v20 = vld [vmem:[#allocation7 + $0x64] ss:$12 sps:$4 sm:$0xff]   ;;  %v1081_v22 = vld [vmem:[#allocation7 + $0x60] ss:$12 sps:$4 sm:$0xff]   ;;  %v1083_v23 = vld [vmem:[#allocation7 + $0x7c] ss:$12 sps:$4 sm:$0xff]  }
  0x55   :  { %v1074_v24 = vld [vmem:[#allocation7 + $0x38] ss:$12 sps:$4 sm:$0xff]   ;;  %v1087_v26 = vld [vmem:[#allocation7 + $0x94] ss:$12 sps:$4 sm:$0xff]   ;;  %v1078_v27 = vld [vmem:[#allocation7 + $0x50] ss:$12 sps:$4 sm:$0xff]  }
  0x56   :  { %502 = vmatpush1.bf16.msra.mxu1 %v1069_v12  ;;  %v1085_v25 = vld [vmem:[#allocation7 + $0x78] ss:$12 sps:$4 sm:$0xff]   ;;  %v1089_v28 = vld [vmem:[#allocation7 + $0x90] ss:$12 sps:$4 sm:$0xff]   ;;  %v1082_v30 = vld [vmem:[#allocation7 + $0x68] ss:$12 sps:$4 sm:$0xff]  }
  0x57   :  { %158 = vmatpush1.bf16.msra.mxu0 %v1059_v7  ;;  %503 = vmatprep.subr.bf16.mxu1 %v1071_v14  ;;  %v1091_v29 = vld [vmem:[#allocation7 + $0xac] ss:$12 sps:$4 sm:$0xff]   ;;  %v1093_v32 = vld [vmem:[#allocation7 + $0xa8] ss:$12 sps:$4 sm:$0xff]   ;;  %v1095_v33 = vld [vmem:[#allocation7 + $0xc4] ss:$12 sps:$4 sm:$0xff]  }
  0x58   :  { %159 = vmatprep.subr.bf16.mxu0 %v1060_v10  ;;  %v1086_v31 = vld [vmem:[#allocation7 + $0x80] ss:$12 sps:$4 sm:$0xff]   ;;  %v1099_v35 = vld [vmem:[#allocation7 + $0xdc] ss:$12 sps:$4 sm:$0xff]   ;;  %v1090_v36 = vld [vmem:[#allocation7 + $0x98] ss:$12 sps:$4 sm:$0xff]  }
  0x59   :  { %v1097_v34 = vld [vmem:[#allocation7 + $0xc0] ss:$12 sps:$4 sm:$0xff]   ;;  %v1101_v37 = vld [vmem:[#allocation7 + $0xd8] ss:$12 sps:$4 sm:$0xff]   ;;  %v1094_v39 = vld [vmem:[#allocation7 + $0xb0] ss:$12 sps:$4 sm:$0xff]  }
  0x5a   :  { %504 = vmatpush1.bf16.msra.mxu1 %v1073_v16  ;;  %v1103_v38 = vld [vmem:[#allocation7 + $0xf4] ss:$12 sps:$4 sm:$0xff]   ;;  %v1105_v40 = vld [vmem:[#allocation7 + $0xf0] ss:$12 sps:$4 sm:$0xff]   ;;  %v1107_v41 = vld [vmem:[#allocation7 + $0x10c] ss:$12 sps:$4 sm:$0xff]  }
  0x5b   :  { %160 = vmatpush1.bf16.msra.mxu0 %v1062_v13  ;;  %505 = vmatprep.subr.bf16.mxu1 %v1075_v17  ;;  %v1098_v42 = vld [vmem:[#allocation7 + $0xc8] ss:$12 sps:$4 sm:$0xff]   ;;  %v1102_v44 = vld [vmem:[#allocation7 + $0xe0] ss:$12 sps:$4 sm:$0xff]   ;;  %v1106_v45 = vld [vmem:[#allocation7 + $0xf8] ss:$12 sps:$4 sm:$0xff]  }
  0x5c   :  { %540 = vmatprep.subr.bf16.mxu0 %v1251_v1  ;;  %v1109_v43 = vld [vmem:[#allocation7 + $0x108] ss:$12 sps:$4 sm:$0xff]   ;;  %v1110_v46 = vld [vmem:[#allocation7 + $0x110] ss:$12 sps:$4 sm:$0xff]   ;;  %v1113_v48 = vld [vmem:[#allocation7 + $0x120] ss:$12 sps:$4 sm:$0xff]  }
  0x5d   :  { %v1111_v47 = vld [vmem:[#allocation7 + $0x124] ss:$12 sps:$4 sm:$0xff]   ;;  %v1114_v49 = vld [vmem:[#allocation7 + $0x128] ss:$12 sps:$4 sm:$0xff]   ;;  %v1118_v52 = vld [vmem:[#allocation7 + $0x140] ss:$12 sps:$4 sm:$0xff]  }
  0x5e   :  { %914 = vmatmul.mubr.msk.bf16.vlgmr.msra.gmra.mrb[0].mxu0 %vm149_vm0, %v88_v15  ;;  %506 = vmatpush1.bf16.msra.mxu1 %v1077_v19  ;;  %v1115_v50 = vld [vmem:[#allocation7 + $0x13c] ss:$12 sps:$4 sm:$0xff]   ;;  %v1117_v51 = vld [vmem:[#allocation7 + $0x138] ss:$12 sps:$4 sm:$0xff]   ;;  %v1252_v53 = vmov 0.0   ;;  %v1120_v54 = vld [vmem:[#allocation8 + $0x40] sm:$0xff]  }
  0x5f   :  { %541 = vmatpush1.bf16.msra.mxu0 %v1066_v18  ;;  %507 = vmatprep.subr.bf16.mxu1 %v1079_v20  ;;  %v1372_v56 = vshrl.u32 %v99_v55, 7  ;;  %v97_v58 = vld [vmem:[%s1410_s2] sm:$0x3]  ;;  %vm495_vm1 = vcmask 785408   ;;  %v1119_v7 = vld [vmem:[#allocation8 + $0x80] sm:$0xff]   ;;  %v1126_v13 = vld [vmem:[#allocation8 + $0x50] sm:$0xff]  }
  0x60   :  { %542 = vmatprep.subr.bf16.mxu0 %v1251_v1  ;;  %v1121_v8 = vld [vmem:[#allocation8] sm:$0xff]   ;;  %v1123_v10 = vld [vmem:[#allocation8 + $0x48] sm:$0xff]   ;;  %v1125_v14 = vld [vmem:[#allocation8 + $0x90] sm:$0xff]   ;;  %vm1253_vm2 = vmmov 0   ;;  %vm895_vm3 = vcmask 7168   ;;  %vm897_vm4 = vcmask 15360  }
  0x61   :  { %v101_v57 = vsub.s32 0, %v1372_v56  ;;  %v105_v59 = vsub.s32 1, %v1372_v56  ;;  %v1122_v11 = vld [vmem:[#allocation8 + $0x88] sm:$0xff]   ;;  %v1127_v15 = vld [vmem:[#allocation8 + $0x10] sm:$0xff]   ;;  %v1129_v16 = vld [vmem:[#allocation8 + $0x58] sm:$0xff]  }
  0x62   :  { %508 = vmatpush1.bf16.msra.mxu1 %v1081_v22  ;;  %v1124_v12 = vld [vmem:[#allocation8 + $0x8] sm:$0xff]   ;;  %v1128_v17 = vld [vmem:[#allocation8 + $0x98] sm:$0xff]   ;;  %v1132_v19 = vld [vmem:[#allocation8 + $0x60] sm:$0xff]  }
  0x63   :  { %543 = vmatpush1.bf16.msra.mxu0 %v1070_v21  ;;  %509 = vmatprep.subr.bf16.mxu1 %v1083_v23  ;;  %v102_v60 = vrot.slane %v97_v58, %v101_v57  ;;  %v106_v61 = vrot.slane %v97_v58, %v105_v59  ;;  %v1130_v18 = vld [vmem:[#allocation8 + $0x18] sm:$0xff]   ;;  %v1131_v20 = vld [vmem:[#allocation8 + $0xa0] sm:$0xff]   ;;  %v1135_v22 = vld [vmem:[#allocation8 + $0x68] sm:$0xff]  }
  0x64   :  { %544 = vmatprep.subr.bf16.mxu0 %v1251_v1  ;;  %v1133_v21 = vld [vmem:[#allocation8 + $0x20] sm:$0xff]   ;;  %v1134_v23 = vld [vmem:[#allocation8 + $0xa8] sm:$0xff]  }
  0x66   :  { %510 = vmatpush1.bf16.msra.mxu1 %v1085_v25  ;;  %v1137_v25 = vld [vmem:[#allocation8 + $0xb0] sm:$0xff]  }
  0x67   :  { %545 = vmatpush1.bf16.msra.mxu0 %v1074_v24  ;;  %511 = vmatprep.subr.bf16.mxu1 %v1087_v26  ;;  %v1136_v24 = vld [vmem:[#allocation8 + $0x28] sm:$0xff]   ;;  %v1138_v26 = vld [vmem:[#allocation8 + $0x70] sm:$0xff]  }
  0x68   :  { %546 = vmatprep.subr.bf16.mxu0 %v1251_v1 }
  0x6a   :  { %512 = vmatpush1.bf16.msra.mxu1 %v1089_v28  ;;  %v1140_v28 = vld [vmem:[#allocation8 + $0xb8] sm:$0xff]  }
  0x6b   :  { %547 = vmatpush1.bf16.msra.mxu0 %v1078_v27  ;;  %513 = vmatprep.subr.bf16.mxu1 %v1091_v29  ;;  %v1139_v27 = vld [vmem:[#allocation8 + $0x30] sm:$0xff]   ;;  %v1141_v29 = vld [vmem:[#allocation8 + $0x78] sm:$0xff]  }
  0x6c   :  { %548 = vmatprep.subr.bf16.mxu0 %v1251_v1 }
  0x6e   :  { %514 = vmatpush1.bf16.msra.mxu1 %v1093_v32  ;;  %v254_v32 = vld [vmem:[%s1412_s4] sm:$0x7] }
  0x6f   :  { %549 = vmatpush1.bf16.msra.mxu0 %v1082_v30  ;;  %515 = vmatprep.subr.bf16.mxu1 %v1095_v33  ;;  %v1142_v30 = vld [vmem:[#allocation8 + $0x38] sm:$0xff]   ;;  %v259_v33 = vrot.slane %v254_v32, %v101_v57  ;;  %v959_v57 = vld [vmem:[%s1414_s6] ss:$0 sm:$0xff]  ;;  %s1254_s6 = smov 1  }
  0x70   :  { %550 = vmatprep.subr.bf16.mxu0 %v1251_v1 }
  0x72   :  { %516 = vmatpush1.bf16.msra.mxu1 %v1097_v34 }
  0x73   :  { %551 = vmatpush1.bf16.msra.mxu0 %v1086_v31  ;;  %517 = vmatprep.subr.bf16.mxu1 %v1099_v35  ;;  %v266_v31 = vsub.s32 2, %v1372_v56  ;;  %v263_v35 = vrot.slane %v254_v32, %v105_v59 }
  0x74   :  { %552 = vmatprep.subr.bf16.mxu0 %v1251_v1 }
  0x75   :  { %v267_v34 = vrot.slane %v254_v32, %v266_v31 }
  0x76   :  { %518 = vmatpush1.bf16.msra.mxu1 %v1101_v37 }
  0x77   :  { %553 = vmatpush1.bf16.msra.mxu0 %v1090_v36  ;;  %519 = vmatprep.subr.bf16.mxu1 %v1103_v38 }
  0x78   :  { %554 = vmatprep.subr.bf16.mxu0 %v1251_v1 }
  0x7a   :  { %520 = vmatpush1.bf16.msra.mxu1 %v1105_v40 }
  0x7b   :  { %555 = vmatpush1.bf16.msra.mxu0 %v1094_v39  ;;  %521 = vmatprep.subr.bf16.mxu1 %v1107_v41 }
  0x7c   :  { %556 = vmatprep.subr.bf16.mxu0 %v1251_v1 }
  0x7e   :  { %522 = vmatpush1.bf16.msra.mxu1 %v1109_v43 }
  0x7f   :  { %557 = vmatpush1.bf16.msra.mxu0 %v1098_v42  ;;  %523 = vmatprep.subr.bf16.mxu1 %v1111_v47 }
  0x80   :  { %558 = vmatprep.subr.bf16.mxu0 %v1251_v1 }
  0x82   :  { %524 = vmatpush1.bf16.msra.mxu1 %v1113_v48 }
  0x83   :  { %559 = vmatpush1.bf16.msra.mxu0 %v1102_v44  ;;  %525 = vmatprep.subr.bf16.mxu1 %v1115_v50 }
  0x84   :  { %560 = vmatprep.subr.bf16.mxu0 %v1251_v1 }
  0x86   :  { %526 = vmatpush1.bf16.msra.mxu1 %v1117_v51 }
  0x87   :  { %561 = vmatpush1.bf16.msra.mxu0 %v1106_v45  ;;  %986 = vmatprep.subr.bf16.mxu1 %v1120_v54 }
  0x88   :  { %562 = vmatprep.subr.bf16.mxu0 %v1251_v1 }
  0x8b   :  { %563 = vmatpush1.bf16.msra.mxu0 %v1110_v46 }
  0x8c   :  { %564 = vmatprep.subr.bf16.mxu0 %v1251_v1 }
  0x8f   :  { %565 = vmatpush1.bf16.msra.mxu0 %v1114_v49 }
  0x90   :  { %566 = vmatprep.subr.bf16.mxu0 %v1251_v1 }
  0x93   :  { %567 = vmatpush1.bf16.msra.mxu0 %v1118_v52 }
  0x94   :  { %1017 = vmatprep.subr.bf16.mxu0 %v1252_v53 }
 0x131   :  { %v187_v62 = vpop.f32.mrb[0].mxu0 }
 0x132   :  { %v188_v63 = vadd.f32 %v187_v62, %v102_v60  ;;  %v189_v0 = vpop.f32.mrb[1].mxu0 }
 0x133   :  { %v190_v1 = vadd.f32 %v189_v0, %v106_v61  ;;  %v191_v2 = vpop.f32.mrb[2].mxu0 }
 0x134   :  { %v194_v3 = vmax.f32 %v188_v63, 0.0  ;;  %v192_v4 = vpop.f32.mrb[3].mxu0 }
 0x135   :  { %v195_v5 = vmax.f32 %v190_v1, 0.0  ;;  %v984_v1 = vld [vmem:[%s1415_s7] ss:$0 sm:$0xff] }
 0x136   :  { %v196_v9 = vpack.c.bf16 %v194_v3, %v194_v3  ;;  %v985_v4 = vld [vmem:[#allocation2] ss:$0 sm:$0xff] }
 0x137   :  { %v197_v6 = vpack.c.bf16 %v195_v5, %v195_v5 }
 0x139   :  { %957 = vmatprep.mubr.msk.bf16.mxu1 %vm495_vm1, %v197_v6  ;;  %958 = vmatprep.mubr.msk.bf16.mxu0 %vm495_vm1, %v197_v6 }
 0x13a   :  { %532 = vmatmul.mubr.bf16.vlgmr.msra.gmra.mrb[0].mxu1 %v196_v9  ;;  %573 = vmatmul.mubr.bf16.vlgmr.msra.gmra.mrb[4].mxu0 %v196_v9 }
 0x13b   :  { %1018 = vmatpush3.bf16.msra.mxu0 %v1119_v7  ;;  %987 = vmatpush3.bf16.msra.mxu1 %v1121_v8 }
 0x13c   :  { %1019 = vmatprep.subr.bf16.mxu0 %v1252_v53  ;;  %988 = vmatprep.subr.bf16.mxu1 %v1123_v10 }
 0x13d   :  { %1033 = vmatprep.mubr.msk.bf16.mxu0 %vm1253_vm2, %v1252_v53 }
 0x13f   :  { %1020 = vmatpush3.bf16.msra.mxu0 %v1122_v11  ;;  %989 = vmatpush3.bf16.msra.mxu1 %v1124_v12 }
 0x140   :  { %1021 = vmatprep.subr.bf16.mxu0 %v1252_v53  ;;  %990 = vmatprep.subr.bf16.mxu1 %v1126_v13 }
 0x143   :  { %1022 = vmatpush3.bf16.msra.mxu0 %v1125_v14  ;;  %991 = vmatpush3.bf16.msra.mxu1 %v1127_v15 }
 0x144   :  { %1023 = vmatprep.subr.bf16.mxu0 %v1252_v53  ;;  %992 = vmatprep.subr.bf16.mxu1 %v1129_v16 }
 0x147   :  { %1024 = vmatpush3.bf16.msra.mxu0 %v1128_v17  ;;  %993 = vmatpush3.bf16.msra.mxu1 %v1130_v18 }
 0x148   :  { %1025 = vmatprep.subr.bf16.mxu0 %v1252_v53  ;;  %994 = vmatprep.subr.bf16.mxu1 %v1132_v19 }
 0x14b   :  { %1026 = vmatpush3.bf16.msra.mxu0 %v1131_v20  ;;  %995 = vmatpush3.bf16.msra.mxu1 %v1133_v21 }
 0x14c   :  { %1027 = vmatprep.subr.bf16.mxu0 %v1252_v53  ;;  %996 = vmatprep.subr.bf16.mxu1 %v1135_v22 }
 0x14f   :  { %1028 = vmatpush3.bf16.msra.mxu0 %v1134_v23  ;;  %997 = vmatpush3.bf16.msra.mxu1 %v1136_v24 }
 0x150   :  { %1029 = vmatprep.subr.bf16.mxu0 %v1252_v53  ;;  %998 = vmatprep.subr.bf16.mxu1 %v1138_v26 }
 0x153   :  { %1030 = vmatpush3.bf16.msra.mxu0 %v1137_v25  ;;  %999 = vmatpush3.bf16.msra.mxu1 %v1139_v27 }
 0x154   :  { %1031 = vmatprep.subr.bf16.mxu0 %v1252_v53  ;;  %1000 = vmatprep.subr.bf16.mxu1 %v1141_v29 }
 0x157   :  { %1032 = vmatpush3.bf16.msra.mxu0 %v1140_v28  ;;  %1001 = vmatpush3.bf16.msra.mxu1 %v1142_v30 }
 0x20d   :  { %v533_v36 = vpop.f32.mrb[0].mxu1  ;;  %v574_v37 = vpop.f32.mrb[4].mxu0 }
 0x20e   :  { %v534_v38 = vadd.f32 %v533_v36, %v259_v33  ;;  %v575_v39 = vadd.f32 %v574_v37, %v267_v34  ;;  %v535_v40 = vpop.f32.mrb[1].mxu1  ;;  %v576_v41 = vpop.f32.mrb[5].mxu0 }
 0x20f   :  { %v536_v42 = vadd.f32 %v535_v40, %v263_v35  ;;  %v537_v43 = vpop.f32.mrb[2].mxu1  ;;  %v577_v44 = vpop.f32.mrb[6].mxu0 }
 0x210   :  { %v580_v45 = vmax.f32 %v534_v38, 0.0  ;;  %v582_v46 = vmax.f32 %v575_v39, 0.0  ;;  %v538_v47 = vpop.f32.mrb[3].mxu1  ;;  %v578_v48 = vpop.f32.mrb[7].mxu0 }
 0x211   :  { %v581_v49 = vmax.f32 %v536_v42, 0.0 }
 0x212   :  { %v585_v50 = vpack.c.bf16 %v582_v46, %v582_v46  ;;  %v583_v52 = vpack.c.bf16 %v580_v45, %v580_v45 }
 0x213   :  { %v584_v51 = vpack.c.bf16 %v581_v49, %v581_v49 }
 0x214   :  { %1034 = vmatmul.mubr.bf16.vlgmr.msra.gmra.mrb[8].mxu0 %v585_v50 }
 0x215   :  { %817 = vmatprep.mubr.bf16.mxu1 %v584_v51 }
 0x216   :  { %818 = vmatmul.mubr.bf16.vlgmr.msra.gmra.mrb[4].mxu1 %v583_v52 }
 0x2e7   :  { %v859_v53 = vpop.f32.mrb[8].mxu0 }
 0x2e8   :  { %v1035_v54 = vpop.f32.mrb[9].mxu0 }
 0x2e9   :  { %v1002_v55 = vpop.f32.mrb[4].mxu1  ;;  %v862_v56 = vpop.f32.mrb[10].mxu0 }
 0x2ea   :  { %v1003_v58 = vpop.f32.mrb[5].mxu1  ;;  %v1036_v59 = vpop.f32.mrb[11].mxu0 }
 0x2eb   :  { %v1004_v60 = vadd.f32 %v1003_v58, %v1002_v55  ;;  %v1005_v61 = vpop.f32.mrb[6].mxu1 }
 0x2ec   :  { %v1006_v62 = vpop.f32.mrb[7].mxu1 }
 0x2ed   :  { %v820_v63 = vadd.f32 %v1004_v60, %v959_v57 }
 0x2ef   :  { %v860_v0 = vadd.f32 %v859_v53, %v820_v63 }
 0x2f1   :  { %v865_v2 = vmax.f32 %v860_v0, 0.0 }
 0x2f3   :  { %v873_v3 = vmul.f32 %v984_v1, %v865_v2 }
 0x2f5   :  { %874 = vadd.xlane.f32.xlu0 %v873_v3 }
 0x382   :  { %v875_v5 = vpop.xlane.xlu0 %874 }
 0x383   :  { %v883_v6 = vadd.f32 %v985_v4, %v875_v5 }
 0x385   :  { %v884_v7 = vsub.f32 0.0, %v883_v6 }
 0x387   :  { %v885_v8 = vmul.f32 1.442695, %v884_v7 }
 0x389   :  { %1143 = vpow2.f32 %v885_v8 }
 0x393   :  { %v1144_v9 = vpop.eup %1143 }
 0x394   :  { %v887_v10 = vadd.f32 1.0, %v1144_v9 }
 0x396   :  { %1145 = vrcp.f32 %v887_v10 }
 0x3a0   :  { %v1146_v11 = vpop.eup %1145 }
 0x3a1   :  { %892 = vrot.lane.b32.xlu0 %v1146_v11, %s1254_s6  ;;  %v890_v12 = vsub.f32 1.0, %v1146_v11 }
 0x413   :  { %v893_v13 = vpop.permute.xlu0 %892 }
 0x414   :  { %v896_v14 = vsel %vm895_vm3, %v890_v12, %v893_v13 }
 0x415   :  { %898 = vst.msk [vmem:[%s1417_s9] sm:$0xff] %vm897_vm4, %v896_v14 }
 0x416   :  { %903 = vsyncpa [#allocation4], 1 }
 0x417   :  { %904 = vsyncpa [#allocation6], 1 }
 0x418   :  { %905 = vsyncpa [#allocation9], 1 }

</bundles_post_ra>
